<compile_context>
chip_gen: v5e
topology: v5e:2x2
jax: 0.10.0
libtpu: 0.0.40
codegen_flags: <defaults>
</compile_context>

<pallas_src>
import functools

import jax
import jax.numpy as jnp
from jax.experimental import pallas as pl
from jax.experimental.pallas import tpu as pltpu


def _round_up(x, m):
    return ((x + m - 1) // m) * m


def _choose_tile(n, unit, target, cap=None):
    """Largest t <= min(target, cap, n) with t % unit == 0 and n % t == 0, else n."""
    hi = min(target, n if cap is None else max(cap, unit))
    t = (hi // unit) * unit
    while t >= unit:
        if n % t == 0:
            return t
        t -= unit
    return n


# ----------------------------- kernels --------------------------------------


def _gc1_fused_kernel(adj_ref, x_ref, w1_ref, w23_ref, out_ref, acc_ref):
    # support2_tile = relu( sum_k adj[i,k] @ (x[k] @ W1) ) @ [W2|W3]
    k = pl.program_id(1)

    @pl.when(k == 0)
    def _():
        acc_ref[...] = jnp.zeros_like(acc_ref)

    # Recompute the support1 tile per k step instead of reading it from HBM
    # (f_in << tile_k, so this MXU work hides under the adj HBM stream).
    sup = jnp.dot(x_ref[...], w1_ref[...], preferred_element_type=jnp.float32)
    acc_ref[...] += jnp.dot(
        adj_ref[...], sup.astype(adj_ref.dtype),
        preferred_element_type=jnp.float32,
    )

    @pl.when(k == pl.num_programs(1) - 1)
    def _():
        hidden1 = jnp.maximum(acc_ref[...], 0.0).astype(w23_ref.dtype)
        out_ref[...] = jnp.dot(
            hidden1, w23_ref[...], preferred_element_type=jnp.float32
        ).astype(out_ref.dtype)


def _gc23_stream_kernel(adj_ref, sup_ref, out_ref):
    # out_tile += adj[i,k] @ support2[k]; out_ref is f32 and stays resident
    # across the k axis (constant output index_map) -> accumulate in place.
    k = pl.program_id(1)

    @pl.when(k == 0)
    def _():
        out_ref[...] = jnp.zeros_like(out_ref)

    out_ref[...] += jnp.dot(
        adj_ref[...], sup_ref[...], preferred_element_type=jnp.float32
    )


def _gc23_resident_kernel(tile_k, adj_ref, sup_ref, out_ref):
    # Same as above, but support2 is fully VMEM-resident; slice the k chunk.
    k = pl.program_id(1)

    @pl.when(k == 0)
    def _():
        out_ref[...] = jnp.zeros_like(out_ref)

    start = pl.multiple_of(k * tile_k, tile_k)
    sup = sup_ref[pl.ds(start, tile_k), :]
    out_ref[...] += jnp.dot(
        adj_ref[...], sup, preferred_element_type=jnp.float32
    )


# ----------------------------- wrapper ---------------------------------------


def gcn_model_vae_forward(
    x, adj, w1, w2, w3, *, tile_m=None, tile_k=None, compute_dtype=jnp.bfloat16
):
    """Returns (z, mu, logvar) with z == mu (eval-mode reparameterize)."""
    n, f_in = x.shape
    h1 = w1.shape[1]
    h2 = w2.shape[1]
    assert adj.shape == (n, n)
    assert w2.shape == (h1, h2) and w3.shape == (h1, h2)

    # Lane-dense padded layer widths (128 is the hardware minimum for
    # unmasked stores; do not pad further).
    p1 = _round_up(h1, 128)
    p2 = _round_up(2 * h2, 128)

    if tile_m is None:
        # Cap at n//2 so the "parallel" row axis has >= 2 tiles (v7x megacore).
        tile_m = _choose_tile(n, 8, 512, cap=max(n // 2, 8))
    if tile_k is None:
        # Prefer multiples of 256 (v6e/v7x MXU contraction width).
        tile_k = _choose_tile(n, 256, 1024)
        if n % tile_k or tile_k % 256:
            tile_k = _choose_tile(n, 128, 1024)
    assert n % tile_m == 0 and (tile_m % 8 == 0 or tile_m == n)
    assert n % tile_k == 0 and (tile_k % 128 == 0 or tile_k == n)

    cd = jnp.dtype(compute_dtype)
    cb = cd.itemsize
    f32b = 4

    # bf16 (default) operand streams; all matmuls accumulate in f32.
    adj_c = adj.astype(cd)
    x_c = x.astype(cd)
    w1p = jnp.pad(w1, ((0, 0), (0, p1 - h1))).astype(cd)
    w23 = jnp.concatenate([w2, w3], axis=1)              # (h1, 2*h2)
    w23p = jnp.pad(w23, ((0, p1 - h1), (0, p2 - 2 * h2))).astype(cd)

    n_row = n // tile_m
    n_red = n // tile_k

    def _vmem_limit(block_bytes, scratch_bytes=0):
        # Exact double-buffered footprint + headroom; cap at 40 MiB so it is
        # valid on v7x (64 MiB physical) as well as v5e/v6e (128 MiB), but
        # never request less than the tiles actually need.
        need = 2 * block_bytes + scratch_bytes
        lim = min(max(2 * need, 16 * 2**20), 40 * 2**20)
        return int(max(lim, need + (2 << 20)))

    # --- stage B: support2 = relu(adj @ (x @ W1)) @ [W2|W3] ------------------
    support2 = pl.pallas_call(
        _gc1_fused_kernel,
        out_shape=jax.ShapeDtypeStruct((n, p2), cd),
        grid=(n_row, n_red),
        in_specs=[
            pl.BlockSpec((tile_m, tile_k), lambda i, k: (i, k)),   # adj
            pl.BlockSpec((tile_k, f_in), lambda i, k: (k, 0)),     # x
            pl.BlockSpec((f_in, p1), lambda i, k: (0, 0)),         # W1 (resident)
            pl.BlockSpec((p1, p2), lambda i, k: (0, 0)),           # [W2|W3] (resident)
        ],
        out_specs=pl.BlockSpec((tile_m, p2), lambda i, k: (i, 0)),
        scratch_shapes=[pltpu.VMEM((tile_m, p1), jnp.float32)],
        compiler_params=pltpu.CompilerParams(
            dimension_semantics=("parallel", "arbitrary"),
            vmem_limit_bytes=_vmem_limit(
                (tile_m * tile_k + tile_k * f_in + f_in * p1 + p1 * p2
                 + tile_m * p2) * cb,
                tile_m * p1 * f32b,
            ),
        ),
        cost_estimate=pl.CostEstimate(
            flops=2 * n_row * n * f_in * p1 + 2 * n * n * p1 + 2 * n * p1 * p2,
            transcendentals=0,
            bytes_accessed=(n * n + n_row * n * f_in + f_in * p1 + p1 * p2
                            + n * p2) * cb,
        ),
    )(adj_c, x_c, w1p, w23p)

    # --- stage C: [mu | logvar] = adj @ support2 -----------------------------
    sup_resident = n * p2 * cb <= 8 * 2**20
    if sup_resident:
        kernel_c = functools.partial(_gc23_resident_kernel, tile_k)
        sup_spec = pl.BlockSpec((n, p2), lambda i, k: (0, 0))      # resident
        sup_block_elems = n * p2
        sup_reads = 1
    else:
        kernel_c = _gc23_stream_kernel
        sup_spec = pl.BlockSpec((tile_k, p2), lambda i, k: (k, 0))  # streamed
        sup_block_elems = tile_k * p2
        sup_reads = n_row

    out_slab = pl.pallas_call(
        kernel_c,
        out_shape=jax.ShapeDtypeStruct((n, p2), jnp.float32),
        grid=(n_row, n_red),
        in_specs=[
            pl.BlockSpec((tile_m, tile_k), lambda i, k: (i, k)),   # adj
            sup_spec,                                              # support2
        ],
        out_specs=pl.BlockSpec((tile_m, p2), lambda i, k: (i, 0)),
        compiler_params=pltpu.CompilerParams(
            dimension_semantics=("parallel", "arbitrary"),
            vmem_limit_bytes=_vmem_limit(
                (tile_m * tile_k + sup_block_elems) * cb
                + tile_m * p2 * f32b
            ),
        ),
        cost_estimate=pl.CostEstimate(
            flops=2 * n * n * p2,
            transcendentals=0,
            bytes_accessed=(n * n * cb + sup_reads * n * p2 * cb
                            + n * p2 * f32b),
        ),
    )(adj_c, support2)

    mu = out_slab[:, :h2]
    logvar = out_slab[:, h2:2 * h2]
    z = mu  # TODO(synk): training-mode path (z = mu + eps*exp(logvar)) and dropout not exercised here.
    return z, mu, logvar


def xavier_uniform(key, fan_in, fan_out):
    # Matches torch.nn.init.xavier_uniform_ (gain=1).
    limit = jnp.sqrt(6.0 / (fan_in + fan_out))
    return jax.random.uniform(
        key, (fan_in, fan_out), dtype=jnp.float32, minval=-limit, maxval=limit
    )


if __name__ == "__main__":
    # Small but tiling-exercising shapes consistent with the module.
    N = 256               # number of graph nodes (cells)
    input_feat_dim = 64
    hidden_dim1 = 32
    hidden_dim2 = 16

    key = jax.random.PRNGKey(0)
    kx, kadj, k1, k2, k3 = jax.random.split(key, 5)

    x = jax.random.normal(kx, (N, input_feat_dim), dtype=jnp.float32)

    # Symmetric, row-normalized dense adjacency (stand-in for the sparse adj).
    a = jax.random.uniform(kadj, (N, N), dtype=jnp.float32)
    a = (a + a.T) * 0.5 + jnp.eye(N, dtype=jnp.float32)
    deg = jnp.sum(a, axis=1, keepdims=True)
    adj = a / deg

    w1 = xavier_uniform(k1, input_feat_dim, hidden_dim1)
    w2 = xavier_uniform(k2, hidden_dim1, hidden_dim2)
    w3 = xavier_uniform(k3, hidden_dim1, hidden_dim2)

    # Pure-JAX reference of the same math (eval mode).
    h1_ref = jnp.maximum(adj @ (x @ w1), 0.0)
    mu_ref = adj @ (h1_ref @ w2)
    logvar_ref = adj @ (h1_ref @ w3)

    # Exact path (f32 operand streams): tight check.
    z32, mu32, lv32 = gcn_model_vae_forward(
        x, adj, w1, w2, w3, compute_dtype=jnp.float32
    )
    jax.block_until_ready((z32, mu32, lv32))
    assert mu32.shape == (N, hidden_dim2) and lv32.shape == (N, hidden_dim2)
    assert jnp.allclose(mu32, mu_ref, atol=1e-4, rtol=1e-3)
    assert jnp.allclose(lv32, logvar_ref, atol=1e-4, rtol=1e-3)
    assert jnp.allclose(z32, mu32)

    # Default fast path: bf16 operand streams, f32 MXU accumulation.
    z, mu, logvar = gcn_model_vae_forward(x, adj, w1, w2, w3)
    jax.block_until_ready((z, mu, logvar))
    assert mu.shape == (N, hidden_dim2) and logvar.shape == (N, hidden_dim2)
    assert jnp.allclose(mu, mu_ref, atol=3e-2, rtol=5e-2)
    assert jnp.allclose(logvar, logvar_ref, atol=3e-2, rtol=5e-2)
    assert jnp.allclose(z, mu)

    print("KERNEL_OK")
</pallas_src>

<mosaic_0001>
module attributes {stable_mosaic.version = 11 : i64} {
  func.func @_gc1_fused_kernel(%arg0: i32, %arg1: i32, %arg2: memref<128x256xf32, #tpu.memory_space<vmem>>, %arg3: memref<256x64xf32, #tpu.memory_space<vmem>>, %arg4: memref<64x128xf32, #tpu.memory_space<vmem>>, %arg5: memref<128x128xf32, #tpu.memory_space<vmem>>, %arg6: memref<128x128xf32, #tpu.memory_space<vmem>>, %arg7: memref<128x128xf32, #tpu.memory_space<vmem>>) attributes {dimension_semantics = [#tpu.dimension_semantics<parallel>, #tpu.dimension_semantics<arbitrary>], iteration_bounds = array<i64: 2, 1>, scalar_prefetch = 0 : i64, scratch_operands = 1 : i64, tpu.core_type = #tpu.core_type<tc>, window_params = [{transform_indices = @transform_0, window_bounds = array<i64: 128, 256>}, {transform_indices = @transform_1, window_bounds = array<i64: 256, 64>}, {pipeline_mode = #tpu.pipeline_mode<synchronous>, transform_indices = @transform_2, window_bounds = array<i64: 64, 128>}, {pipeline_mode = #tpu.pipeline_mode<synchronous>, transform_indices = @transform_3, window_bounds = array<i64: 128, 128>}, {transform_indices = @transform_4, window_bounds = array<i64: 128, 128>}]} {
    %c0_i32 = arith.constant 0 : i32
    %0 = arith.cmpi eq, %arg1, %c0_i32 : i32
    %1 = arith.extui %0 : i1 to i32
    %c0_i32_0 = arith.constant 0 : i32
    %2 = arith.cmpi ne, %1, %c0_i32_0 : i32
    scf.if %2 {
      %cst_13 = arith.constant 0.000000e+00 : f32
      %14 = vector.broadcast %cst_13 : f32 to vector<128x128xf32>
      %c0_14 = arith.constant 0 : index
      %c0_15 = arith.constant 0 : index
      %15 = vector.load %arg7[%c0_14, %c0_15] : memref<128x128xf32, #tpu.memory_space<vmem>>, vector<128x128xf32>
      tpu.vector_store %arg7[%c0_14, %c0_15], %14 {strides = array<i32>} : memref<128x128xf32, #tpu.memory_space<vmem>>, vector<128x128xf32>,
    } else {
    }
    %c0 = arith.constant 0 : index
    %c0_1 = arith.constant 0 : index
    %3 = vector.load %arg3[%c0, %c0_1] : memref<256x64xf32, #tpu.memory_space<vmem>>, vector<256x64xf32>
    %c0_2 = arith.constant 0 : index
    %c0_3 = arith.constant 0 : index
    %4 = vector.load %arg4[%c0_2, %c0_3] : memref<64x128xf32, #tpu.memory_space<vmem>>, vector<64x128xf32>
    %cst = arith.constant dense<0.000000e+00> : vector<256x128xf32>
    %5 = tpu.matmul %3, %4, %cst {dimension_numbers = #tpu.dot_dimension_numbers<[1], [0], [0], [1], [0, 0, 1, 1], [], []>} : vector<256x64xf32>, vector<64x128xf32>, vector<256x128xf32> -> vector<256x128xf32>
    %c0_4 = arith.constant 0 : index
    %c0_5 = arith.constant 0 : index
    %6 = vector.load %arg7[%c0_4, %c0_5] : memref<128x128xf32, #tpu.memory_space<vmem>>, vector<128x128xf32>
    %c0_6 = arith.constant 0 : index
    %c0_7 = arith.constant 0 : index
    %7 = vector.load %arg2[%c0_6, %c0_7] : memref<128x256xf32, #tpu.memory_space<vmem>>, vector<128x256xf32>
    %cst_8 = arith.constant dense<0.000000e+00> : vector<128x128xf32>
    %8 = tpu.matmul %7, %5, %cst_8 {dimension_numbers = #tpu.dot_dimension_numbers<[1], [0], [0], [1], [0, 0, 1, 1], [], []>} : vector<128x256xf32>, vector<256x128xf32>, vector<128x128xf32> -> vector<128x128xf32>
    %9 = arith.addf %6, %8 : vector<128x128xf32>
    %c0_9 = arith.constant 0 : index
    %c0_10 = arith.constant 0 : index
    %10 = vector.load %arg7[%c0_9, %c0_10] : memref<128x128xf32, #tpu.memory_space<vmem>>, vector<128x128xf32>
    tpu.vector_store %arg7[%c0_9, %c0_10], %9 {strides = array<i32>} : memref<128x128xf32, #tpu.memory_space<vmem>>, vector<128x128xf32>,
    %c0_i32_11 = arith.constant 0 : i32
    %11 = arith.cmpi eq, %arg1, %c0_i32_11 : i32
    %12 = arith.extui %11 : i1 to i32
    %c0_i32_12 = arith.constant 0 : i32
    %13 = arith.cmpi ne, %12, %c0_i32_12 : i32
    scf.if %13 {
      %c0_13 = arith.constant 0 : index
      %c0_14 = arith.constant 0 : index
      %14 = vector.load %arg7[%c0_13, %c0_14] : memref<128x128xf32, #tpu.memory_space<vmem>>, vector<128x128xf32>
      %cst_15 = arith.constant 0.000000e+00 : f32
      %15 = vector.broadcast %cst_15 : f32 to vector<128x128xf32>
      %16 = arith.maximumf %14, %15 : vector<128x128xf32>
      %c0_16 = arith.constant 0 : index
      %c0_17 = arith.constant 0 : index
      %17 = vector.load %arg5[%c0_16, %c0_17] : memref<128x128xf32, #tpu.memory_space<vmem>>, vector<128x128xf32>
      %cst_18 = arith.constant dense<0.000000e+00> : vector<128x128xf32>
      %18 = tpu.matmul %16, %17, %cst_18 {dimension_numbers = #tpu.dot_dimension_numbers<[1], [0], [0], [1], [0, 0, 1, 1], [], []>} : vector<128x128xf32>, vector<128x128xf32>, vector<128x128xf32> -> vector<128x128xf32>
      %c0_19 = arith.constant 0 : index
      %c0_20 = arith.constant 0 : index
      %19 = vector.load %arg6[%c0_19, %c0_20] : memref<128x128xf32, #tpu.memory_space<vmem>>, vector<128x128xf32>
      tpu.vector_store %arg6[%c0_19, %c0_20], %18 {strides = array<i32>} : memref<128x128xf32, #tpu.memory_space<vmem>>, vector<128x128xf32>,
    } else {
    }
    return
  }
  func.func @transform_0(%arg0: i32, %arg1: i32) -> (i32, i32) {
    %c0_i32 = arith.constant 0 : i32
    return %arg0, %arg1 : i32, i32
  }
  func.func @transform_1(%arg0: i32, %arg1: i32) -> (i32, i32) {
    %c0_i32 = arith.constant 0 : i32
    %c0_i32_0 = arith.constant 0 : i32
    return %arg1, %c0_i32 : i32, i32
  }
  func.func @transform_2(%arg0: i32, %arg1: i32) -> (i32, i32) {
    %c0_i32 = arith.constant 0 : i32
    %c0_i32_0 = arith.constant 0 : i32
    %c0_i32_1 = arith.constant 0 : i32
    return %c0_i32, %c0_i32_0 : i32, i32
  }
  func.func @transform_3(%arg0: i32, %arg1: i32) -> (i32, i32) {
    %c0_i32 = arith.constant 0 : i32
    %c0_i32_0 = arith.constant 0 : i32
    %c0_i32_1 = arith.constant 0 : i32
    return %c0_i32, %c0_i32_0 : i32, i32
  }
  func.func @transform_4(%arg0: i32, %arg1: i32) -> (i32, i32) {
    %c0_i32 = arith.constant 0 : i32
    %c0_i32_0 = arith.constant 0 : i32
    return %arg0, %c0_i32 : i32, i32
  }
}

</mosaic_0001>

<bundles_post_ra>
// kernel: tpu_custom_call.1
= control target key start
LH: loop header
LB: loop body
LE: loop exit
PB: predicated region body
PF: predicated region fallthrough
CT: control target
= control target key end

     0   :  { %9 = vsyncpa [#allocation4], 0  ;;  %s1649_s0 = inlined_call_operand.hbm [shape: f32[256,256], index: 0, kind: input, shape index: {}]   ;;  %s1650_s1 = inlined_call_operand.vmem [shape: f32[256,64], index: 1, kind: input, shape index: {}]   ;;  %s1651_s2 = inlined_call_operand.vmem [shape: f32[64,128], index: 2, kind: input, shape index: {}]   ;;  %s1652_s3 = inlined_call_operand.vmem [shape: f32[128,128], index: 3, kind: input, shape index: {}]   ;;  %s1653_s4 = inlined_call_operand.hbm [shape: f32[256,128], index: 4, kind: output, shape index: {}]  }
   0x1   :  { %11 = vsyncpa [#allocation4 + $0x1], 0 }
   0x2   :  { %12 = vsyncpa [#allocation5], 0 }
   0x3   :  { %14 = vsyncpa [#allocation5 + $0x1], 0  ;;  %s1272_s15 = smov 0   ;;  %s1274_s16 = smov 0  }
   0x4   :  { %s1276_s17 = smov 0   ;;  %s1278_s18 = smov 0  }
   0x5   :  { %s1280_s19 = smov 0   ;;  %s1282_s20 = smov 0  }
   0x6 LB: > { %s987_s21 = sadd.s32 4294967295, %s1241_s20   ;;  %s988_s22 = sadd.s32 4294967294, %s1241_s20   ;;  %s1241_s20 = sphi %s1282_s20, %s20_s20   ;;  %s1237_s19 = sphi %s1280_s19, %s1662_s19   ;;  %s1233_s18 = sphi %s1278_s18, %s1661_s18   ;;  %s1229_s17 = sphi %s1276_s17, %s1660_s17   ;;  %s1225_s16 = sphi %s1274_s16, %s1659_s16   ;;  %s1221_s15 = sphi %s1272_s15, %s1658_s15  }
   0x7   : > { %s32_s23 = sadd.s32 1, %s1237_s19  ;;  %s41_s24 = sadd.s32 1, %s1229_s17 }
   0x8   : > { %p34_p0 = scmp.ge.s32.totalorder %s32_s23, 2  ;;  %p48_p1 = scmp.ne.s32.totalorder %s1229_s17, %s1225_s16 }
   0x9   : > { %p49_p2 = scmp.eq.s32.totalorder %s1241_s20, 0  ;;  %p54_p3 = scmp.ne.s32.totalorder %s1225_s16, %s1221_s15 }
   0xa   : > { %s1664_s23 = smov (%p34_p0, %s32_s23), 0  ;;  %p55_p5 = scmp.eq.s32.totalorder %s987_s21, 0 }
   0xb   : > { %p1313_p4 = por %p49_p2, %p48_p1  ;;  %s36_s26 = ssub.s32 %s1237_s19, %s1664_s23 }
   0xc   : > { %p146_p6 = scmp.eq.s32.totalorder %s987_s21, 1  ;;  %p39_p7 = scmp.eq.s32.totalorder %s36_s26, 0 }
   0xd   : > { %p1319_p8 = por %p55_p5, %p54_p3  ;;  %p152_p10 = scmp.eq.s32.totalorder %s988_s22, 1 }
   0xe   : > { %p1323_p9 = por %p146_p6, %p48_p1  ;;  %p991_p12 = scmp.ge.s32.totalorder %s1241_s20, 2 }
   0xf   : > { %s1328_s29 = scalar_select %p39_p7, %s1229_s17, %s41_s24  }
  0x10   : > { %p1330_p11 = por %p152_p10, %p54_p3  ;;  %p1075_p13 = scmp.lt.s32.totalorder %s1241_s20, 2 }
  0x11   : > { %s187_s5 = sand.u32 1, %s1229_s17   ;;  %s1037_s7 = sshll.u32 %s1237_s19, 8 }
  0x12   : > { %s992_s6 = sshll.u32 %s187_s5, 8  ;;  %s199_s10 = scalar_lea.hbm %s1649_s0, %s1037_s7 }
  0x13   : > { %s191_s11 = scalar_lea.vmem [#allocation3], %s992_s6  ;;  %s200_s13 = sshll.u32 %s199_s10, 4  ;;  %s201_s13 = int_to_ptr.hbm [resolvable:$true] %s200_s13 }
  0x14   : > { %s202_s12 = sshll.u32 %s191_s11, 4  ;;  %p1068_p0 = pnand %p1075_p13, %p1313_p4  ;;  %s203_s12 = int_to_ptr.vmem [resolvable:$true] %s202_s12 }
  0x15   : > { %p996_p1 = scmp.ge.s32.totalorder %s1241_s20, 1  ;;  %s188_s14 = scalar_lea.sflag [#allocation4], %s187_s5 }
  0x16   : > { %s1243_s21 = smov 256   ;;  %s1244_s22 = smov 16  }
  0x17   : > { %1070 = dma.hbm_to_vmem [thread:$0]  (!%p1068_p0), %s201_s13, 4096, %s203_s12, %s188_s14, %s1243_s21, %s1243_s21, %s1244_s22  }
  0x18   : > { %p210_p2 = scmp.lt.s32.totalorder %s1241_s20, 3 }
  0x1a   : > { %p211_p3 = pnand %p996_p1, %p210_p2 }
  0x1b   : > { %s1346_s24 = sand.u32 (!%p211_p3), 1, %s1225_s16  }
  0x1c   : > { %214 = sbr.rel (%p211_p3) target bundleno = 737 (0x2e1), region = 36  ;;  %s997_s26 = sshll.u32 (!%p211_p3), %s1346_s24, 8 }
  0x1d   : > { %s217_s6 = scalar_lea.sflag (!%p211_p3), [#allocation4], %s1346_s24  ;;  %s1350_s7 = scalar_lea.vmem (!%p211_p3), [#allocation3], %s997_s26 }
  0x21   : > { %1212 = dma.done.wait (%p1319_p8), %s217_s6, 4096  }
  0x22   : > { %1214 = vsyncadd (%p1319_p8), %s217_s6, 4294963200  ;;  %v319_v0 = vld [vmem:[%s1651_s2 + $0x38] sm:$0xff]  ;;  %v318_v1 = vld [vmem:[%s1651_s2 + $0x30] sm:$0xff]  ;;  %vm320_vm0 = vcmask 523264   ;;  %s1038_s5 = sshll.u32 %s1233_s18, 7  ;;  %s873_s12 = scalar_lea.sflag [#allocation5], %s1346_s24 }
  0x23   : > { %425 = vmatpush.msra.mxu0 %v319_v0  ;;  %1040 = vmatpush.msra.mxu2 %v319_v0  ;;  %v317_v2 = vld [vmem:[%s1651_s2 + $0x28] sm:$0xff]  ;;  %v316_v3 = vld [vmem:[%s1651_s2 + $0x20] sm:$0xff]  ;;  %v315_v4 = vld [vmem:[%s1651_s2 + $0x18] sm:$0xff]  ;;  %s884_s10 = scalar_lea.hbm %s1653_s4, %s1038_s5  ;;  %s1179_s22 = scalar_lea.hbm %s1653_s4, 256 }
  0x24   : > { %1039 = vmatpush.msra.mxu1 %v319_v0  ;;  %1041 = vmatpush.msra.mxu3 %v319_v0  ;;  %v314_v5 = vld [vmem:[%s1651_s2 + $0x10] sm:$0xff]  ;;  %v313_v6 = vld [vmem:[%s1651_s2 + $0x8] sm:$0xff]  ;;  %v312_v7 = vld [vmem:[%s1651_s2] sm:$0xff]  ;;  %s887_s27 = sshll.u32 %s884_s10, 4  ;;  %s888_s27 = int_to_ptr.hbm [resolvable:$true] %s887_s27 }
  0x25   : > { %426 = vmatpush.msra.mxu0 %v318_v1  ;;  %1043 = vmatpush.msra.mxu2 %v318_v1  ;;  %v280_v8 = vld [vmem:[%s1650_s1] sm:$0xff]  ;;  %v281_v9 = vld [vmem:[%s1650_s1 + $0x8] sm:$0xff]  ;;  %v282_v10 = vld [vmem:[%s1650_s1 + $0x10] sm:$0xff]  ;;  %s1173_s13 = sshra.s32 %s888_s27, 4  ;;  %s1174_s13 = int_to_ptr.hbm [resolvable:$true] %s1173_s13 }
  0x26   : > { %1042 = vmatpush.msra.mxu1 %v318_v1  ;;  %1044 = vmatpush.msra.mxu3 %v318_v1  ;;  %v283_v11 = vld [vmem:[%s1650_s1 + $0x18] sm:$0xff]  ;;  %v284_v12 = vld [vmem:[%s1650_s1 + $0x20] sm:$0xff]  ;;  %v285_v13 = vld [vmem:[%s1650_s1 + $0x28] sm:$0xff]  ;;  %s1175_s14 = scalar_lea.hbm %s1174_s13, 128  ;;  %p1180_p7 = scmp.lt.s32.totalorder %s1174_s13, %s1653_s4 }
  0x27   : > { %427 = vmatpush.msra.mxu0 %v317_v2  ;;  %1046 = vmatpush.msra.mxu2 %v317_v2  ;;  %v306_v14 = vld [vmem:[%s1650_s1 + $0xd0] sm:$0xff]  ;;  %v301_v15 = vld [vmem:[%s1650_s1 + $0xa8] sm:$0xff]  ;;  %v307_v17 = vld [vmem:[%s1650_s1 + $0xd8] sm:$0xff]  ;;  %p1176_p4 = scmp.ne.s32.totalorder %s1174_s13, %s1175_s14  ;;  %p1181_p8 = scmp.lt.s32.totalorder %s1179_s22, %s1175_s14 }
  0x28   : > { %1045 = vmatpush.msra.mxu1 %v317_v2  ;;  %1047 = vmatpush.msra.mxu3 %v317_v2  ;;  %v286_v16 = vld [vmem:[%s1650_s1 + $0x30] sm:$0xff]  ;;  %v287_v20 = vld [vmem:[%s1650_s1 + $0x38] sm:$0xff]  ;;  %v308_v21 = vld [vmem:[%s1650_s1 + $0xe0] sm:$0xff] }
  0x29   : > { %428 = vmatpush.msra.mxu0 %v316_v3  ;;  %1049 = vmatpush.msra.mxu2 %v316_v3  ;;  %v310_v18 = vld [vmem:[%s1650_s1 + $0xf0] sm:$0xff]  ;;  %v311_v22 = vld [vmem:[%s1650_s1 + $0xf8] sm:$0xff]  ;;  %v288_v24 = vld [vmem:[%s1650_s1 + $0x40] sm:$0xff]  ;;  %p1177_p5 = pnand %p1176_p4, %p1323_p9  ;;  %p1182_p10 = por %p1181_p8, %p1180_p7 }
  0x2a   : > { %1048 = vmatpush.msra.mxu1 %v316_v3  ;;  %1050 = vmatpush.msra.mxu3 %v316_v3  ;;  %v302_v19 = vld [vmem:[%s1650_s1 + $0xb0] sm:$0xff]  ;;  %v303_v23 = vld [vmem:[%s1650_s1 + $0xb8] sm:$0xff]  ;;  %v309_v25 = vld [vmem:[%s1650_s1 + $0xe8] sm:$0xff] }
  0x2b   : > { %429 = vmatpush.msra.mxu0 %v315_v4  ;;  %1052 = vmatpush.msra.mxu2 %v315_v4  ;;  %v304_v26 = vld [vmem:[%s1650_s1 + $0xc0] sm:$0xff]  ;;  %v289_v27 = vld [vmem:[%s1650_s1 + $0x48] sm:$0xff]  ;;  %v290_v29 = vld [vmem:[%s1650_s1 + $0x50] sm:$0xff]  ;;  %p1178_p6 = pneg %p1177_p5 }
  0x2c   : > { %1051 = vmatpush.msra.mxu1 %v315_v4  ;;  %1053 = vmatpush.msra.mxu3 %v315_v4  ;;  %v305_v28 = vld [vmem:[%s1650_s1 + $0xc8] sm:$0xff]  ;;  %v291_v30 = vld [vmem:[%s1650_s1 + $0x58] sm:$0xff]  ;;  %v292_v31 = vld [vmem:[%s1650_s1 + $0x60] sm:$0xff] }
  0x2d   : > { %430 = vmatpush.msra.mxu0 %v314_v5  ;;  %1055 = vmatpush.msra.mxu2 %v314_v5  ;;  %v293_v32 = vld [vmem:[%s1650_s1 + $0x68] sm:$0xff]  ;;  %v294_v33 = vld [vmem:[%s1650_s1 + $0x70] sm:$0xff]  ;;  %v295_v34 = vld [vmem:[%s1650_s1 + $0x78] sm:$0xff]  ;;  %p1183_p13 = pnand %p1182_p10, %p1178_p6 }
  0x2e   : > { %1054 = vmatpush.msra.mxu1 %v314_v5  ;;  %1056 = vmatpush.msra.mxu3 %v314_v5  ;;  %v296_v36 = vld [vmem:[%s1650_s1 + $0x80] sm:$0xff]  ;;  %v297_v38 = vld [vmem:[%s1650_s1 + $0x88] sm:$0xff]  ;;  %v298_v40 = vld [vmem:[%s1650_s1 + $0x90] sm:$0xff] }
  0x2f   : > { %431 = vmatpush.msra.mxu0 %v313_v6  ;;  %1058 = vmatpush.msra.mxu2 %v313_v6  ;;  %v299_v42 = vld [vmem:[%s1650_s1 + $0x98] sm:$0xff]  ;;  %v300_v44 = vld [vmem:[%s1650_s1 + $0xa0] sm:$0xff] }
  0x30   : > { %1057 = vmatpush.msra.mxu1 %v313_v6  ;;  %1059 = vmatpush.msra.mxu3 %v313_v6  ;;  %v546_v6 = vld [vmem:[%s1350_s7] sm:$0xff] }
  0x31   : > { %432 = vmatpush.msra.mxu0 %v312_v7  ;;  %1061 = vmatpush.msra.mxu2 %v312_v7 }
  0x32   : > { %999 = vmatmul.msk.f32.vlgmr.msra.gmra.mxu0 %vm320_vm0, %v280_v8  ;;  %1060 = vmatpush.msra.mxu1 %v312_v7  ;;  %v548_v8 = vld [vmem:[%s1350_s7 + $0x10] sm:$0xff] }
  0x33   : > { %1062 = vmatpush.msra.mxu3 %v312_v7  ;;  %1025 = vmatmul.msk.f32.vlgmr.msra.gmra.mxu2 %vm320_vm0, %v306_v14  ;;  %v554_v14 = vld [vmem:[%s1350_s7 + $0x40] sm:$0xff] }
  0x34   : > { %1020 = vmatmul.msk.f32.vlgmr.msra.gmra.mxu1 %vm320_vm0, %v301_v15  ;;  %1029 = vmatmul.msk.f32.vlgmr.msra.gmra.mxu3 %vm320_vm0, %v310_v18  ;;  %v551_v15 = vld [vmem:[%s1350_s7 + $0x28] sm:$0xff]  ;;  %v558_v18 = vld [vmem:[%s1350_s7 + $0x60] sm:$0xff] }
  0x3a   : > { %1000 = vmatmul.msk.f32.gmra.mxu0 %vm320_vm0, %v281_v9 }
  0x3b   : > { %1026 = vmatmul.msk.f32.gmra.mxu2 %vm320_vm0, %v307_v17  ;;  %v553_v17 = vld [vmem:[%s1350_s7 + $0x38] sm:$0xff] }
  0x3c   : > { %1021 = vmatmul.msk.f32.gmra.mxu1 %vm320_vm0, %v302_v19  ;;  %1030 = vmatmul.msk.f32.gmra.mxu3 %vm320_vm0, %v311_v22  ;;  %v555_v19 = vld [vmem:[%s1350_s7 + $0x48] sm:$0xff]  ;;  %v562_v22 = vld [vmem:[%s1350_s7 + $0x80] sm:$0xff] }
  0x42   : > { %1001 = vmatmul.msk.f32.gmra.mxu0 %vm320_vm0, %v282_v10  ;;  %v550_v10 = vld [vmem:[%s1350_s7 + $0x20] sm:$0xff] }
  0x43   : > { %1027 = vmatmul.msk.f32.gmra.mxu2 %vm320_vm0, %v308_v21  ;;  %v557_v21 = vld [vmem:[%s1350_s7 + $0x58] sm:$0xff] }
  0x44   : > { %1022 = vmatmul.msk.f32.gmra.mxu1 %vm320_vm0, %v303_v23  ;;  %v559_v23 = vld [vmem:[%s1350_s7 + $0x68] sm:$0xff] }
  0x4a   : > { %1002 = vmatmul.msk.f32.gmra.mxu0 %vm320_vm0, %v283_v11  ;;  %v547_v11 = vld [vmem:[%s1350_s7 + $0x8] sm:$0xff] }
  0x4b   : > { %1028 = vmatmul.msk.f32.gmra.mxu2 %vm320_vm0, %v309_v25  ;;  %v561_v25 = vld [vmem:[%s1350_s7 + $0x78] sm:$0xff] }
  0x4c   : > { %1023 = vmatmul.msk.f32.gmra.mxu1 %vm320_vm0, %v304_v26  ;;  %v566_v26 = vld [vmem:[%s1350_s7 + $0xa0] sm:$0xff] }
  0x52   : > { %1003 = vmatmul.msk.f32.gmra.mxu0 %vm320_vm0, %v284_v12  ;;  %v552_v12 = vld [vmem:[%s1350_s7 + $0x30] sm:$0xff] }
  0x54   : > { %1024 = vmatmul.msk.f32.gmra.mxu1 %vm320_vm0, %v305_v28  ;;  %v568_v28 = vld [vmem:[%s1350_s7 + $0xb0] sm:$0xff] }
  0x5a   : > { %1004 = vmatmul.msk.f32.gmra.mxu0 %vm320_vm0, %v285_v13  ;;  %v549_v13 = vld [vmem:[%s1350_s7 + $0x18] sm:$0xff] }
  0x62   : > { %1005 = vmatmul.msk.f32.gmra.mxu0 %vm320_vm0, %v286_v16  ;;  %v556_v16 = vld [vmem:[%s1350_s7 + $0x50] sm:$0xff] }
  0x6a   : > { %1006 = vmatmul.msk.f32.gmra.mxu0 %vm320_vm0, %v287_v20  ;;  %v560_v20 = vld [vmem:[%s1350_s7 + $0x70] sm:$0xff] }
  0x72   : > { %1007 = vmatmul.msk.f32.gmra.mxu0 %vm320_vm0, %v288_v24  ;;  %v564_v24 = vld [vmem:[%s1350_s7 + $0x90] sm:$0xff] }
  0x7a   : > { %1008 = vmatmul.msk.f32.gmra.mxu0 %vm320_vm0, %v289_v27  ;;  %v563_v27 = vld [vmem:[%s1350_s7 + $0x88] sm:$0xff] }
  0x82   : > { %1009 = vmatmul.msk.f32.gmra.mxu0 %vm320_vm0, %v290_v29  ;;  %v565_v29 = vld [vmem:[%s1350_s7 + $0x98] sm:$0xff] }
  0x8a   : > { %1010 = vmatmul.msk.f32.gmra.mxu0 %vm320_vm0, %v291_v30  ;;  %v790_v30 = vld [vmem:[%s1652_s3 + $0x78] sm:$0xff] }
  0x8b   : > { %791 = vmatpush.msrb.mxu3 %v790_v30 }
  0x92   : > { %1011 = vmatmul.msk.f32.gmra.mxu0 %vm320_vm0, %v292_v31  ;;  %v789_v31 = vld [vmem:[%s1652_s3 + $0x70] sm:$0xff] }
  0x93   : > { %792 = vmatpush.msrb.mxu3 %v789_v31 }
  0x9a   : > { %1012 = vmatmul.msk.f32.gmra.mxu0 %vm320_vm0, %v293_v32  ;;  %v788_v32 = vld [vmem:[%s1652_s3 + $0x68] sm:$0xff] }
  0x9b   : > { %793 = vmatpush.msrb.mxu3 %v788_v32 }
  0xa2   : > { %1013 = vmatmul.msk.f32.gmra.mxu0 %vm320_vm0, %v294_v33  ;;  %v570_v33 = vld [vmem:[%s1350_s7 + $0xc0] sm:$0xff] }
  0xaa   : > { %1014 = vmatmul.msk.f32.gmra.mxu0 %vm320_vm0, %v295_v34  ;;  %v787_v34 = vld [vmem:[%s1652_s3 + $0x60] sm:$0xff] }
  0xab   : > { %794 = vmatpush.msrb.mxu3 %v787_v34 }
  0xaf   : > { %v1488_v35 = vpop.f32.mrf.mxu0 }
  0xb1   : > { %v497_v46 = vpop.f32.mrf.mxu1 }
  0xb2   : > { %1015 = vmatmul.msk.f32.gmra.mxu0 %vm320_vm0, %v296_v36  ;;  %v786_v36 = vld [vmem:[%s1652_s3 + $0x58] sm:$0xff] }
  0xb3   : > { %795 = vmatpush.msrb.mxu3 %v786_v36 }
  0xb6   : > { %v512_v47 = vpop.f32.mrf.mxu2 }
  0xb7   : > { %v437_v37 = vpop.f32.mrf.mxu0  ;;  %v524_v52 = vpop.f32.mrf.mxu3 }
  0xb9   : > { %v500_v49 = vpop.f32.mrf.mxu1 }
  0xba   : > { %1016 = vmatmul.msk.f32.gmra.mxu0 %vm320_vm0, %v297_v38  ;;  %v784_v38 = vld [vmem:[%s1652_s3 + $0x48] sm:$0xff] }
  0xbe   : > { %v515_v50 = vpop.f32.mrf.mxu2 }
  0xbf   : > { %v440_v39 = vpop.f32.mrf.mxu0  ;;  %v527_v56 = vpop.f32.mrf.mxu3 }
  0xc0   : > { %643 = vmatpush.msrb.mxu2 %v527_v56 }
  0xc1   : > { %v503_v53 = vpop.f32.mrf.mxu1 }
  0xc2   : > { %1017 = vmatmul.msk.f32.gmra.mxu0 %vm320_vm0, %v298_v40  ;;  %644 = vmatpush.msrb.mxu2 %v524_v52  ;;  %v783_v40 = vld [vmem:[%s1652_s3 + $0x40] sm:$0xff]  ;;  %v573_v52 = vld [vmem:[%s1350_s7 + $0xd8] sm:$0xff] }
  0xc6   : > { %v518_v54 = vpop.f32.mrf.mxu2 }
  0xc7   : > { %v443_v41 = vpop.f32.mrf.mxu0 }
  0xc9   : > { %v506_v57 = vpop.f32.mrf.mxu1 }
  0xca   : > { %1018 = vmatmul.msk.f32.gmra.mxu0 %vm320_vm0, %v299_v42  ;;  %v782_v42 = vld [vmem:[%s1652_s3 + $0x38] sm:$0xff] }
  0xce   : > { %v521_v58 = vpop.f32.mrf.mxu2 }
  0xcf   : > { %v446_v43 = vpop.f32.mrf.mxu0  ;;  %645 = vmatpush.msrb.mxu2 %v521_v58 }
  0xd1   : > { %646 = vmatpush.msrb.mxu2 %v518_v54  ;;  %v509_v60 = vpop.f32.mrf.mxu1 }
  0xd2   : > { %1019 = vmatmul.msk.f32.gmra.mxu0 %vm320_vm0, %v300_v44  ;;  %v780_v44 = vld [vmem:[%s1652_s3 + $0x28] sm:$0xff] }
  0xd3   : > { %647 = vmatpush.msrb.mxu2 %v515_v50  ;;  %v576_v50 = vld [vmem:[%s1350_s7 + $0xf0] sm:$0xff] }
  0xd5   : > { %648 = vmatpush.msrb.mxu2 %v512_v47  ;;  %v571_v47 = vld [vmem:[%s1350_s7 + $0xc8] sm:$0xff] }
  0xd7   : > { %v449_v45 = vpop.f32.mrf.mxu0  ;;  %649 = vmatpush.msrb.mxu2 %v509_v60 }
  0xd9   : > { %650 = vmatpush.msrb.mxu2 %v506_v57  ;;  %v577_v57 = vld [vmem:[%s1350_s7 + $0xf8] sm:$0xff] }
  0xdb   : > { %651 = vmatpush.msrb.mxu2 %v503_v53  ;;  %v775_v53 = vld [vmem:[%s1652_s3] sm:$0xff] }
  0xdd   : > { %652 = vmatpush.msrb.mxu2 %v500_v49  ;;  %v777_v49 = vld [vmem:[%s1652_s3 + $0x10] sm:$0xff] }
  0xdf   : > { %v452_v48 = vpop.f32.mrf.mxu0  ;;  %653 = vmatpush.msrb.mxu2 %v497_v46  ;;  %v779_v46 = vld [vmem:[%s1652_s3 + $0x20] sm:$0xff] }
  0xe7   : > { %v455_v51 = vpop.f32.mrf.mxu0 }
  0xef   : > { %v458_v55 = vpop.f32.mrf.mxu0 }
  0xf7   : > { %v461_v59 = vpop.f32.mrf.mxu0 }
  0xff   : > { %v464_v61 = vpop.f32.mrf.mxu0 }
 0x107   : > { %v467_v62 = vpop.f32.mrf.mxu0 }
 0x10f   : > { %v470_v63 = vpop.f32.mrf.mxu0 }
 0x117   : > { %v473_v0 = vpop.f32.mrf.mxu0 }
 0x11f   : > { %v476_v1 = vpop.f32.mrf.mxu0 }
 0x127   : > { %v479_v2 = vpop.f32.mrf.mxu0 }
 0x128   : > { %578 = vmatpush.msrb.mxu1 %v479_v2 }
 0x12a   : > { %579 = vmatpush.msrb.mxu1 %v476_v1 }
 0x12c   : > { %580 = vmatpush.msrb.mxu1 %v473_v0 }
 0x12e   : > { %581 = vmatpush.msrb.mxu1 %v470_v63 }
 0x12f   : > { %v482_v3 = vpop.f32.mrf.mxu0 }
 0x130   : > { %582 = vmatpush.msrb.mxu1 %v467_v62 }
 0x132   : > { %583 = vmatpush.msrb.mxu1 %v464_v61 }
 0x134   : > { %584 = vmatpush.msrb.mxu1 %v461_v59 }
 0x136   : > { %585 = vmatpush.msrb.mxu1 %v458_v55  ;;  %v575_v55 = vld [vmem:[%s1350_s7 + $0xe8] sm:$0xff] }
 0x137   : > { %v485_v4 = vpop.f32.mrf.mxu0 }
 0x138   : > { %586 = vmatpush.msrb.mxu1 %v455_v51  ;;  %v776_v51 = vld [vmem:[%s1652_s3 + $0x8] sm:$0xff] }
 0x13a   : > { %587 = vmatpush.msrb.mxu1 %v452_v48  ;;  %v778_v48 = vld [vmem:[%s1652_s3 + $0x18] sm:$0xff] }
 0x13c   : > { %588 = vmatpush.msrb.mxu1 %v449_v45  ;;  %v574_v45 = vld [vmem:[%s1350_s7 + $0xe0] sm:$0xff] }
 0x13e   : > { %589 = vmatpush.msrb.mxu1 %v446_v43  ;;  %v781_v43 = vld [vmem:[%s1652_s3 + $0x30] sm:$0xff] }
 0x13f   : > { %v488_v5 = vpop.f32.mrf.mxu0 }
 0x140   : > { %590 = vmatpush.msrb.mxu1 %v443_v41  ;;  %v569_v41 = vld [vmem:[%s1350_s7 + $0xb8] sm:$0xff] }
 0x142   : > { %591 = vmatpush.msrb.mxu1 %v440_v39  ;;  %v572_v39 = vld [vmem:[%s1350_s7 + $0xd0] sm:$0xff] }
 0x144   : > { %592 = vmatpush.msrb.mxu1 %v437_v37  ;;  %v785_v37 = vld [vmem:[%s1652_s3 + $0x50] sm:$0xff] }
 0x145   : > { %796 = vmatpush.msrb.mxu3 %v785_v37 }
 0x146   : > { %593 = vmatpush.msrb.mxu1 %v1488_v35  ;;  %v567_v35 = vld [vmem:[%s1350_s7 + $0xa8] sm:$0xff]  ;;  %s998_s7 = sshll.u32 %s1346_s24, 7 }
 0x147   : > { %v491_v7 = vpop.f32.mrf.mxu0  ;;  %594 = vmatmul.f32.vlgmr.msrb.gmra.mxu1 %v546_v6  ;;  %797 = vmatpush.msrb.mxu3 %v784_v38  ;;  %s1592_s25 = scalar_lea.vmem [#allocation6], %s998_s7 }
 0x148   : > { %s885_s11 = sshll.u32 %s1592_s25, 4  ;;  %s886_s11 = int_to_ptr.vmem [resolvable:$true] %s885_s11 }
 0x149   : > { %798 = vmatpush.msrb.mxu3 %v783_v40 }
 0x14b   : > { %799 = vmatpush.msrb.mxu3 %v782_v42 }
 0x14d   : > { %800 = vmatpush.msrb.mxu3 %v781_v43 }
 0x14f   : > { %v494_v9 = vpop.f32.mrf.mxu0  ;;  %597 = vmatmul.f32.gmra.mxu1 %v548_v8  ;;  %801 = vmatpush.msrb.mxu3 %v780_v44 }
 0x150   : > { %654 = vmatpush.msrb.mxu2 %v494_v9 }
 0x151   : > { %802 = vmatpush.msrb.mxu3 %v779_v46 }
 0x152   : > { %655 = vmatpush.msrb.mxu2 %v491_v7 }
 0x153   : > { %803 = vmatpush.msrb.mxu3 %v778_v48 }
 0x154   : > { %656 = vmatpush.msrb.mxu2 %v488_v5 }
 0x155   : > { %804 = vmatpush.msrb.mxu3 %v777_v49 }
 0x156   : > { %657 = vmatpush.msrb.mxu2 %v485_v4 }
 0x157   : > { %600 = vmatmul.f32.gmra.mxu1 %v550_v10  ;;  %805 = vmatpush.msrb.mxu3 %v776_v51 }
 0x158   : > { %658 = vmatpush.msrb.mxu2 %v482_v3 }
 0x159   : > { %659 = vmatmul.f32.vlgmr.msrb.gmra.mxu2 %v547_v11  ;;  %806 = vmatpush.msrb.mxu3 %v775_v53 }
 0x15f   : > { %603 = vmatmul.f32.gmra.mxu1 %v552_v12 }
 0x161   : > { %662 = vmatmul.f32.gmra.mxu2 %v549_v13 }
 0x167   : > { %606 = vmatmul.f32.gmra.mxu1 %v554_v14 }
 0x169   : > { %665 = vmatmul.f32.gmra.mxu2 %v551_v15 }
 0x16f   : > { %609 = vmatmul.f32.gmra.mxu1 %v556_v16 }
 0x171   : > { %668 = vmatmul.f32.gmra.mxu2 %v553_v17 }
 0x177   : > { %612 = vmatmul.f32.gmra.mxu1 %v558_v18 }
 0x179   : > { %671 = vmatmul.f32.gmra.mxu2 %v555_v19 }
 0x17f   : > { %615 = vmatmul.f32.gmra.mxu1 %v560_v20 }
 0x181   : > { %674 = vmatmul.f32.gmra.mxu2 %v557_v21 }
 0x187   : > { %618 = vmatmul.f32.gmra.mxu1 %v562_v22 }
 0x189   : > { %677 = vmatmul.f32.gmra.mxu2 %v559_v23 }
 0x18f   : > { %621 = vmatmul.f32.gmra.mxu1 %v564_v24 }
 0x191   : > { %680 = vmatmul.f32.gmra.mxu2 %v561_v25 }
 0x197   : > { %624 = vmatmul.f32.gmra.mxu1 %v566_v26 }
 0x199   : > { %683 = vmatmul.f32.gmra.mxu2 %v563_v27 }
 0x19f   : > { %627 = vmatmul.f32.gmra.mxu1 %v568_v28 }
 0x1a1   : > { %686 = vmatmul.f32.gmra.mxu2 %v565_v29 }
 0x1a7   : > { %630 = vmatmul.f32.gmra.mxu1 %v570_v33 }
 0x1a9   : > { %689 = vmatmul.f32.gmra.mxu2 %v567_v35 }
 0x1af   : > { %633 = vmatmul.f32.gmra.mxu1 %v572_v39 }
 0x1b1   : > { %692 = vmatmul.f32.gmra.mxu2 %v569_v41 }
 0x1b7   : > { %636 = vmatmul.f32.gmra.mxu1 %v574_v45 }
 0x1b9   : > { %695 = vmatmul.f32.gmra.mxu2 %v571_v47 }
 0x1bf   : > { %639 = vmatmul.f32.gmra.mxu1 %v576_v50 }
 0x1c1   : > { %698 = vmatmul.f32.gmra.mxu2 %v573_v52 }
 0x1c4   : > { %v595_v54 = vpop.f32.mrf.mxu1 }
 0x1c9   : > { %701 = vmatmul.f32.gmra.mxu2 %v575_v55 }
 0x1cc   : > { %v598_v56 = vpop.f32.mrf.mxu1 }
 0x1d1   : > { %704 = vmatmul.f32.gmra.mxu2 %v577_v57 }
 0x1d4   : > { %v601_v58 = vpop.f32.mrf.mxu1 }
 0x1dc   : > { %v660_v59 = vpop.f32.mrf.mxu2  ;;  %v604_v60 = vpop.f32.mrf.mxu1 }
 0x1dd   : > { %v661_v61 = vadd.f32 %v660_v59, %v595_v54 }
 0x1df   : > { %v759_v62 = vmax.f32 %v661_v61, 0.0 }
 0x1e1   : > { %807 = vmatmul.f32.vlgmr.msrb.gmra.mxu3 %v759_v62 }
 0x1e4   : > { %v663_v63 = vpop.f32.mrf.mxu2  ;;  %v607_v0 = vpop.f32.mrf.mxu1 }
 0x1e5   : > { %v664_v1 = vadd.f32 %v663_v63, %v598_v56 }
 0x1e7   : > { %v760_v2 = vmax.f32 %v664_v1, 0.0 }
 0x1e9   : > { %810 = vmatmul.f32.gmra.mxu3 %v760_v2 }
 0x1ec   : > { %v666_v3 = vpop.f32.mrf.mxu2  ;;  %v610_v5 = vpop.f32.mrf.mxu1 }
 0x1ed   : > { %v667_v4 = vadd.f32 %v666_v3, %v601_v58 }
 0x1ef   : > { %v761_v6 = vmax.f32 %v667_v4, 0.0 }
 0x1f1   : > { %813 = vmatmul.f32.gmra.mxu3 %v761_v6 }
 0x1f4   : > { %v669_v7 = vpop.f32.mrf.mxu2  ;;  %v613_v10 = vpop.f32.mrf.mxu1 }
 0x1f5   : > { %v670_v8 = vadd.f32 %v669_v7, %v604_v60 }
 0x1f7   : > { %v762_v9 = vmax.f32 %v670_v8, 0.0 }
 0x1f9   : > { %816 = vmatmul.f32.gmra.mxu3 %v762_v9 }
 0x1fc   : > { %v672_v11 = vpop.f32.mrf.mxu2  ;;  %v616_v14 = vpop.f32.mrf.mxu1 }
 0x1fd   : > { %v673_v12 = vadd.f32 %v672_v11, %v607_v0 }
 0x1ff   : > { %v763_v13 = vmax.f32 %v673_v12, 0.0 }
 0x201   : > { %819 = vmatmul.f32.gmra.mxu3 %v763_v13 }
 0x204   : > { %v675_v15 = vpop.f32.mrf.mxu2  ;;  %v619_v19 = vpop.f32.mrf.mxu1 }
 0x205   : > { %v676_v16 = vadd.f32 %v675_v15, %v610_v5 }
 0x207   : > { %v764_v17 = vmax.f32 %v676_v16, 0.0 }
 0x209   : > { %822 = vmatmul.f32.gmra.mxu3 %v764_v17 }
 0x20c   : > { %v678_v18 = vpop.f32.mrf.mxu2  ;;  %v622_v24 = vpop.f32.mrf.mxu1 }
 0x20d   : > { %v679_v20 = vadd.f32 %v678_v18, %v613_v10 }
 0x20f   : > { %v765_v21 = vmax.f32 %v679_v20, 0.0 }
 0x211   : > { %825 = vmatmul.f32.gmra.mxu3 %v765_v21 }
 0x214   : > { %v681_v22 = vpop.f32.mrf.mxu2  ;;  %v625_v29 = vpop.f32.mrf.mxu1 }
 0x215   : > { %v682_v23 = vadd.f32 %v681_v22, %v616_v14 }
 0x217   : > { %v766_v25 = vmax.f32 %v682_v23, 0.0 }
 0x219   : > { %828 = vmatmul.f32.gmra.mxu3 %v766_v25 }
 0x21c   : > { %v684_v26 = vpop.f32.mrf.mxu2  ;;  %v628_v33 = vpop.f32.mrf.mxu1 }
 0x21d   : > { %v685_v27 = vadd.f32 %v684_v26, %v619_v19 }
 0x21f   : > { %v767_v28 = vmax.f32 %v685_v27, 0.0 }
 0x221   : > { %831 = vmatmul.f32.gmra.mxu3 %v767_v28 }
 0x224   : > { %v687_v30 = vpop.f32.mrf.mxu2  ;;  %v631_v38 = vpop.f32.mrf.mxu1 }
 0x225   : > { %v688_v31 = vadd.f32 %v687_v30, %v622_v24 }
 0x227   : > { %v768_v32 = vmax.f32 %v688_v31, 0.0 }
 0x229   : > { %834 = vmatmul.f32.gmra.mxu3 %v768_v32 }
 0x22c   : > { %v690_v34 = vpop.f32.mrf.mxu2  ;;  %v634_v43 = vpop.f32.mrf.mxu1 }
 0x22d   : > { %v691_v35 = vadd.f32 %v690_v34, %v625_v29 }
 0x22f   : > { %v769_v36 = vmax.f32 %v691_v35, 0.0 }
 0x231   : > { %837 = vmatmul.f32.gmra.mxu3 %v769_v36 }
 0x234   : > { %v693_v37 = vpop.f32.mrf.mxu2  ;;  %v637_v48 = vpop.f32.mrf.mxu1 }
 0x235   : > { %v694_v39 = vadd.f32 %v693_v37, %v628_v33 }
 0x237   : > { %v770_v40 = vmax.f32 %v694_v39, 0.0 }
 0x239   : > { %840 = vmatmul.f32.gmra.mxu3 %v770_v40 }
 0x23c   : > { %v696_v41 = vpop.f32.mrf.mxu2  ;;  %v640_v52 = vpop.f32.mrf.mxu1 }
 0x23d   : > { %v697_v42 = vadd.f32 %v696_v41, %v631_v38 }
 0x23f   : > { %v771_v44 = vmax.f32 %v697_v42, 0.0 }
 0x241   : > { %843 = vmatmul.f32.gmra.mxu3 %v771_v44 }
 0x244   : > { %v699_v45 = vpop.f32.mrf.mxu2 }
 0x245   : > { %v700_v46 = vadd.f32 %v699_v45, %v634_v43 }
 0x247   : > { %v772_v47 = vmax.f32 %v700_v46, 0.0 }
 0x249   : > { %846 = vmatmul.f32.gmra.mxu3 %v772_v47 }
 0x24c   : > { %v702_v49 = vpop.f32.mrf.mxu2 }
 0x24d   : > { %v703_v50 = vadd.f32 %v702_v49, %v637_v48 }
 0x24f   : > { %v773_v51 = vmax.f32 %v703_v50, 0.0 }
 0x251   : > { %849 = vmatmul.f32.gmra.mxu3 %v773_v51 }
 0x254   : > { %v705_v53 = vpop.f32.mrf.mxu2 }
 0x255   : > { %v706_v54 = vadd.f32 %v705_v53, %v640_v52 }
 0x257   : > { %v774_v55 = vmax.f32 %v706_v54, 0.0 }
 0x259   : > { %852 = vmatmul.f32.gmra.mxu3 %v774_v55 }
 0x264   : > { %v808_v56 = vpop.f32.mrf.mxu3 }
 0x265   : > { %856 = vst [vmem:[%s1592_s25] sm:$0xff] %v808_v56 }
 0x26c   : > { %v811_v57 = vpop.f32.mrf.mxu3 }
 0x26d   : > { %857 = vst [vmem:[%s1592_s25 + $0x8] sm:$0xff] %v811_v57 }
 0x274   : > { %v814_v58 = vpop.f32.mrf.mxu3 }
 0x275   : > { %858 = vst [vmem:[%s1592_s25 + $0x10] sm:$0xff] %v814_v58 }
 0x27c   : > { %v817_v59 = vpop.f32.mrf.mxu3 }
 0x27d   : > { %859 = vst [vmem:[%s1592_s25 + $0x18] sm:$0xff] %v817_v59 }
 0x284   : > { %v820_v60 = vpop.f32.mrf.mxu3 }
 0x285   : > { %860 = vst [vmem:[%s1592_s25 + $0x20] sm:$0xff] %v820_v60 }
 0x28c   : > { %v823_v61 = vpop.f32.mrf.mxu3 }
 0x28d   : > { %861 = vst [vmem:[%s1592_s25 + $0x28] sm:$0xff] %v823_v61 }
 0x294   : > { %v826_v62 = vpop.f32.mrf.mxu3 }
 0x295   : > { %862 = vst [vmem:[%s1592_s25 + $0x30] sm:$0xff] %v826_v62 }
 0x29c   : > { %v829_v63 = vpop.f32.mrf.mxu3 }
 0x29d   : > { %863 = vst [vmem:[%s1592_s25 + $0x38] sm:$0xff] %v829_v63 }
 0x2a4   : > { %v832_v0 = vpop.f32.mrf.mxu3 }
 0x2a5   : > { %864 = vst [vmem:[%s1592_s25 + $0x40] sm:$0xff] %v832_v0 }
 0x2ac   : > { %v835_v1 = vpop.f32.mrf.mxu3 }
 0x2ad   : > { %865 = vst [vmem:[%s1592_s25 + $0x48] sm:$0xff] %v835_v1 }
 0x2b4   : > { %v838_v2 = vpop.f32.mrf.mxu3 }
 0x2b5   : > { %866 = vst [vmem:[%s1592_s25 + $0x50] sm:$0xff] %v838_v2 }
 0x2bc   : > { %v841_v3 = vpop.f32.mrf.mxu3 }
 0x2bd   : > { %867 = vst [vmem:[%s1592_s25 + $0x58] sm:$0xff] %v841_v3 }
 0x2c4   : > { %v844_v4 = vpop.f32.mrf.mxu3 }
 0x2c5   : > { %868 = vst [vmem:[%s1592_s25 + $0x60] sm:$0xff] %v844_v4 }
 0x2cc   : > { %v847_v5 = vpop.f32.mrf.mxu3 }
 0x2cd   : > { %869 = vst [vmem:[%s1592_s25 + $0x68] sm:$0xff] %v847_v5 }
 0x2d4   : > { %v850_v6 = vpop.f32.mrf.mxu3 }
 0x2d5   : > { %870 = vst [vmem:[%s1592_s25 + $0x70] sm:$0xff] %v850_v6 }
 0x2dc   : > { %v853_v7 = vpop.f32.mrf.mxu3 }
 0x2dd   : > { %871 = vst [vmem:[%s1592_s25 + $0x78] sm:$0xff] %v853_v7 }
 0x2de   : > { %1186 = shalt.err (!%p1183_p13)
}
 0x2df   : > { %s1245_s24 = smov 128   ;;  %s1246_s7 = smov 8  }
 0x2e0   : > { %1065 = dma.vmem_to_hbm [thread:$0]  (%p1323_p9), %s886_s11, 2048, %s888_s27, %s873_s12, %s1245_s24, %s1245_s24, %s1246_s7  }
 0x2e1 PF: > { %s902_s25 = sand.u32 1, %s1221_s15   ;;  %p1072_p0 = pnand %p991_p12, %p1330_p11 }
 0x2e2   : > { %s903_s5 = scalar_lea.sflag [#allocation5], %s902_s25 }
 0x2e3   : > { %p1073_p1 = pneg %p1072_p0 }
 0x2e5   : > { %1216 = dma.done.wait (%p1073_p1), %s903_s5, 2048  }
 0x2e6   : > { %1218 = vsyncadd (%p1073_p1), %s903_s5, 4294965248  ;;  %s20_s20 = sadd.s32 1, %s1241_s20   ;;  %s1658_s15 = smov %s1225_s16 }
 0x2e7   : > { %p17_p2 = scmp.ge.s32.totalorder %s20_s20, 4   ;;  %s1659_s16 = smov %s1229_s17 }
 0x2e8   : > { %s1660_s17 = smov %s1328_s29  ;;  %s1661_s18 = smov %s1237_s19 }
 0x2e9   : > { %s1662_s19 = smov %s1664_s23  ;;  %19 = sbr.rel (!%p17_p2) target bundleno = 6 (0x6), region = 92 }
 0x2ee   :  { %909 = vsyncpa [#allocation4], 1 }
 0x2ef   :  { %911 = vsyncpa [#allocation4 + $0x1], 1 }
 0x2f0   :  { %912 = vsyncpa [#allocation5], 1 }
 0x2f1   :  { %914 = vsyncpa [#allocation5 + $0x1], 1 }

</bundles_post_ra>
